<compile_context>
chip_gen: v7x
topology: tpu7x:2x2x1
jax: 0.10.0
libtpu: 0.0.40
codegen_flags: <defaults>
</compile_context>

<pallas_src>
import functools

import jax
import jax.numpy as jnp
from jax.experimental import pallas as pl
from jax.experimental.pallas import tpu as pltpu


def _ldam_kernel(n_valid, tile_n, x_ref, tgt_ref, sw_ref, swm_ref, loss_ref):
    # x_ref:    (C, TILE_N)  logits tile, classes on sublanes, samples on lanes
    # tgt_ref:  (1, TILE_N)  int32 targets
    # sw_ref:   (C, 1)       s * weight              (precomputed in wrapper)
    # swm_ref:  (C, 1)       s * weight * m_list     (precomputed in wrapper)
    # loss_ref: (1, TILE_N)  per-sample loss (0 for padded samples)
    x = x_ref[...].astype(jnp.float32)
    tgt = tgt_ref[...]
    sw = sw_ref[...]
    swm = swm_ref[...]
    c, tn = x.shape

    cls = jax.lax.broadcasted_iota(jnp.int32, (c, tn), 0)
    onehot = (cls == tgt).astype(jnp.float32)          # (C, TILE_N)

    # Folded margin + per-class scale + s:  z = s*w*x - onehot * s*w*m
    z = x * sw - onehot * swm

    # Numerically stable cross-entropy over the class (sublane) axis.
    zmax = jnp.max(z, axis=0, keepdims=True)           # (1, TILE_N)
    lse = jnp.log(jnp.sum(jnp.exp(z - zmax), axis=0, keepdims=True)) + zmax
    zt = jnp.sum(onehot * z, axis=0, keepdims=True)    # z at the target class
    loss = lse - zt                                    # (1, TILE_N)

    # Zero out ragged-tile padding so the host-side sum is exact.
    lane = jax.lax.broadcasted_iota(jnp.int32, (1, tn), 1)
    sample = pl.program_id(0) * tile_n + lane
    loss_ref[...] = jnp.where(sample < n_valid, loss, 0.0)


def ldam_loss(x, target, m_list, weight, s=30.0, *, tile_n=None,
              vmem_limit_bytes=32 * 1024 * 1024):
    n, c = x.shape

    if tile_n is None:
        # ~4 MiB per x tile -> ~8 MiB double-buffered: comfortable on v5e/v6e
        # (128 MiB) and on v7x (64 MiB physical / 32 MiB scoped default).
        target_tile_bytes = 4 * 1024 * 1024
        tile_n = target_tile_bytes // max(1, c * x.dtype.itemsize)
        tile_n = max(128, min(2048, (tile_n // 128) * 128))

    num_tiles = pl.cdiv(n, tile_n)
    n_pad = num_tiles * tile_n

    # Batch on the lane axis; keep x in its NATIVE dtype (no f32 up-cast here).
    x_t = x.T                                          # (C, N)
    tgt = target.reshape(1, n).astype(jnp.int32)       # (1, N)
    if n_pad != n:
        x_t = jnp.pad(x_t, ((0, 0), (0, n_pad - n)))
        tgt = jnp.pad(tgt, ((0, 0), (0, n_pad - n)))

    # Fold s and weight into two per-class vectors (broadcast over lanes).
    sw = (s * weight).reshape(c, 1).astype(jnp.float32)
    swm = (s * weight * m_list).reshape(c, 1).astype(jnp.float32)

    kernel = functools.partial(_ldam_kernel, n, tile_n)
    per_sample = pl.pallas_call(
        kernel,
        out_shape=jax.ShapeDtypeStruct((1, n_pad), jnp.float32),
        grid=(num_tiles,),
        in_specs=[
            pl.BlockSpec((c, tile_n), lambda i: (0, i)),   # x tile
            pl.BlockSpec((1, tile_n), lambda i: (0, i)),   # targets tile
            pl.BlockSpec((c, 1), lambda i: (0, 0)),        # s*w   (resident)
            pl.BlockSpec((c, 1), lambda i: (0, 0)),        # s*w*m (resident)
        ],
        out_specs=pl.BlockSpec((1, tile_n), lambda i: (0, i)),
        compiler_params=pltpu.CompilerParams(
            dimension_semantics=("parallel",),             # lets v7x use both TCs
            vmem_limit_bytes=vmem_limit_bytes,
        ),
    )(x_t, tgt, sw, swm)

    # Padded lanes are already zero; mean over the true batch size.
    return jnp.sum(per_sample) / n


def _reference_loss(x, target, m_list, weight, s):
    # Pure-JAX reference mirroring the PyTorch module's forward.
    c = x.shape[1]
    onehot = jax.nn.one_hot(target, c, dtype=jnp.float32)
    batch_m = m_list[target][:, None]
    x_m = x - batch_m
    output = jnp.where(onehot.astype(bool), x_m, x)
    output = output * weight[None, :]
    logp = jax.nn.log_softmax(s * output, axis=1)
    return -jnp.mean(jnp.sum(onehot * logp, axis=1))


if __name__ == "__main__":
    # Deterministic "module init": 5-class LDAM, matching weight list length.
    cls_num_list = jnp.array([50.0, 100.0, 200.0, 400.0, 800.0], dtype=jnp.float32)
    max_m = 0.5
    s = 30.0
    m_list = 1.0 / jnp.sqrt(jnp.sqrt(cls_num_list))
    m_list = m_list * (max_m / jnp.max(m_list))
    weight = jnp.array([0.03, 0.07, 0.2, 0.35, 0.35], dtype=jnp.float32)

    # Small example inputs.
    batch, num_classes = 8, 5
    key = jax.random.PRNGKey(0)
    kx, kt = jax.random.split(key)
    x = jax.random.normal(kx, (batch, num_classes), dtype=jnp.float32)
    target = jax.random.randint(kt, (batch,), 0, num_classes, dtype=jnp.int32)

    loss = jax.block_until_ready(ldam_loss(x, target, m_list, weight, s))
    ref = jax.block_until_ready(_reference_loss(x, target, m_list, weight, s))

    assert jnp.allclose(loss, ref, rtol=1e-5, atol=1e-5), (loss, ref)
    print("KERNEL_OK")
</pallas_src>

<mosaic_0001>
module attributes {stable_mosaic.version = 11 : i64} {
  func.func @_ldam_kernel(%arg0: i32, %arg1: memref<5x2048xf32, #tpu.memory_space<vmem>>, %arg2: memref<1x2048xi32, #tpu.memory_space<vmem>>, %arg3: memref<5x1xf32, #tpu.memory_space<vmem>>, %arg4: memref<5x1xf32, #tpu.memory_space<vmem>>, %arg5: memref<1x2048xf32, #tpu.memory_space<vmem>>) attributes {dimension_semantics = [#tpu.dimension_semantics<parallel>], iteration_bounds = array<i64: 1>, scalar_prefetch = 0 : i64, scratch_operands = 0 : i64, tpu.core_type = #tpu.core_type<tc>, window_params = [{transform_indices = @transform_0, window_bounds = array<i64: 5, 2048>}, {transform_indices = @transform_1, window_bounds = array<i64: 1, 2048>}, {pipeline_mode = #tpu.pipeline_mode<synchronous>, transform_indices = @transform_2, window_bounds = array<i64: 5, 1>}, {pipeline_mode = #tpu.pipeline_mode<synchronous>, transform_indices = @transform_3, window_bounds = array<i64: 5, 1>}, {transform_indices = @transform_4, window_bounds = array<i64: 1, 2048>}]} {
    %c0 = arith.constant 0 : index
    %c0_0 = arith.constant 0 : index
    %0 = vector.load %arg1[%c0, %c0_0] : memref<5x2048xf32, #tpu.memory_space<vmem>>, vector<5x2048xf32>
    %c0_1 = arith.constant 0 : index
    %c0_2 = arith.constant 0 : index
    %1 = vector.load %arg2[%c0_1, %c0_2] : memref<1x2048xi32, #tpu.memory_space<vmem>>, vector<1x2048xi32>
    %c0_3 = arith.constant 0 : index
    %c0_4 = arith.constant 0 : index
    %2 = vector.load %arg3[%c0_3, %c0_4] : memref<5x1xf32, #tpu.memory_space<vmem>>, vector<5x1xf32>
    %c0_5 = arith.constant 0 : index
    %c0_6 = arith.constant 0 : index
    %3 = vector.load %arg4[%c0_5, %c0_6] : memref<5x1xf32, #tpu.memory_space<vmem>>, vector<5x1xf32>
    %4 = tpu.iota {dimensions = array<i32: 0>} : vector<5x2048xi32>
    %5 = vector.broadcast %1 : vector<1x2048xi32> to vector<5x2048xi32>
    %6 = arith.cmpi eq, %4, %5 : vector<5x2048xi32>
    %7 = arith.extui %6 : vector<5x2048xi1> to vector<5x2048xi32>
    %8 = arith.sitofp %7 : vector<5x2048xi32> to vector<5x2048xf32>
    %9 = vector.broadcast %2 : vector<5x1xf32> to vector<5x2048xf32>
    %10 = arith.mulf %0, %9 : vector<5x2048xf32>
    %11 = vector.broadcast %3 : vector<5x1xf32> to vector<5x2048xf32>
    %12 = arith.mulf %8, %11 : vector<5x2048xf32>
    %13 = arith.subf %10, %12 : vector<5x2048xf32>
    %cst = arith.constant dense<0xFF800000> : vector<2048xf32>
    %14 = vector.multi_reduction <maximumf>, %13, %cst [0] : vector<5x2048xf32> to vector<2048xf32>
    %15 = vector.shape_cast %14 : vector<2048xf32> to vector<1x2048xf32>
    %16 = vector.broadcast %15 : vector<1x2048xf32> to vector<5x2048xf32>
    %17 = arith.subf %13, %16 : vector<5x2048xf32>
    %18 = math.exp %17 : vector<5x2048xf32>
    %cst_7 = arith.constant dense<0.000000e+00> : vector<2048xf32>
    %19 = vector.multi_reduction <add>, %18, %cst_7 [0] : vector<5x2048xf32> to vector<2048xf32>
    %20 = vector.shape_cast %19 : vector<2048xf32> to vector<1x2048xf32>
    %21 = math.log %20 : vector<1x2048xf32>
    %22 = arith.addf %21, %15 : vector<1x2048xf32>
    %23 = arith.mulf %8, %13 : vector<5x2048xf32>
    %cst_8 = arith.constant dense<0.000000e+00> : vector<2048xf32>
    %24 = vector.multi_reduction <add>, %23, %cst_8 [0] : vector<5x2048xf32> to vector<2048xf32>
    %25 = vector.shape_cast %24 : vector<2048xf32> to vector<1x2048xf32>
    %26 = arith.subf %22, %25 : vector<1x2048xf32>
    %27 = tpu.iota {dimensions = array<i32: 1>} : vector<1x2048xi32>
    %c2048_i32 = arith.constant 2048 : i32
    %28 = arith.muli %arg0, %c2048_i32 : i32
    %29 = vector.broadcast %28 : i32 to vector<1x2048xi32>
    %30 = arith.addi %29, %27 : vector<1x2048xi32>
    %c8_i32 = arith.constant 8 : i32
    %31 = vector.broadcast %c8_i32 : i32 to vector<1x2048xi32>
    %32 = arith.cmpi slt, %30, %31 : vector<1x2048xi32>
    %cst_9 = arith.constant 0.000000e+00 : f32
    %33 = vector.broadcast %cst_9 : f32 to vector<1x2048xf32>
    %34 = arith.select %32, %26, %33 : vector<1x2048xi1>, vector<1x2048xf32>
    %c0_10 = arith.constant 0 : index
    %c0_11 = arith.constant 0 : index
    %35 = vector.load %arg5[%c0_10, %c0_11] : memref<1x2048xf32, #tpu.memory_space<vmem>>, vector<1x2048xf32>
    tpu.vector_store %arg5[%c0_10, %c0_11], %34 {strides = array<i32>} : memref<1x2048xf32, #tpu.memory_space<vmem>>, vector<1x2048xf32>,
    return
  }
  func.func @transform_0(%arg0: i32) -> (i32, i32) {
    %c0_i32 = arith.constant 0 : i32
    %c0_i32_0 = arith.constant 0 : i32
    return %c0_i32, %arg0 : i32, i32
  }
  func.func @transform_1(%arg0: i32) -> (i32, i32) {
    %c0_i32 = arith.constant 0 : i32
    %c0_i32_0 = arith.constant 0 : i32
    return %c0_i32, %arg0 : i32, i32
  }
  func.func @transform_2(%arg0: i32) -> (i32, i32) {
    %c0_i32 = arith.constant 0 : i32
    %c0_i32_0 = arith.constant 0 : i32
    %c0_i32_1 = arith.constant 0 : i32
    return %c0_i32, %c0_i32_0 : i32, i32
  }
  func.func @transform_3(%arg0: i32) -> (i32, i32) {
    %c0_i32 = arith.constant 0 : i32
    %c0_i32_0 = arith.constant 0 : i32
    %c0_i32_1 = arith.constant 0 : i32
    return %c0_i32, %c0_i32_0 : i32, i32
  }
  func.func @transform_4(%arg0: i32) -> (i32, i32) {
    %c0_i32 = arith.constant 0 : i32
    %c0_i32_0 = arith.constant 0 : i32
    return %c0_i32, %arg0 : i32, i32
  }
}

</mosaic_0001>

<bundles_post_ra>
// kernel: tpu_custom_call.1
= control target key start
LH: loop header
LB: loop body
LE: loop exit
PB: predicated region body
PF: predicated region fallthrough
CT: control target
= control target key end

     0   :  { %9 = vsyncpa [#allocation3], 0  ;;  %s1027_s0 = inlined_call_operand.hbm [shape: f32[5,2048], index: 0, kind: input, shape index: {}]   ;;  %s1028_s1 = inlined_call_operand.vmem [shape: s32[1,2048], index: 1, kind: input, shape index: {}]   ;;  %s1029_s2 = inlined_call_operand.vmem [shape: f32[5,1], index: 2, kind: input, shape index: {}]   ;;  %s1030_s3 = inlined_call_operand.vmem [shape: f32[5,1], index: 3, kind: input, shape index: {}]   ;;  %s1031_s4 = inlined_call_operand.hbm [shape: f32[1,2048], index: 4, kind: output, shape index: {}]  }
   0x1   :  { %10 = vsyncpa [#allocation4], 0  ;;  %s961_s15 = smov [#allocation2]   ;;  %s913_s19 = scalar_lea.hbm %s1027_s0, 2048 }
   0x2   :  { %s17_s16 = sshll.u32 %s961_s15, 4  ;;  %p914_p0 = scmp.ne.s32.totalorder %s1027_s0, %s913_s19  ;;  %s18_s16 = int_to_ptr.vmem [resolvable:$true] %s17_s16 }
   0x3   :  { %p917_p1 = scmp.lt.u32.totalorder %s913_s19, %s1027_s0 }
   0x5   :  { %p919_p2 = pnand %p917_p1, %p914_p0 }
   0x7   :  { %922 = shalt.err (!%p919_p2)
}
   0x8   :  { %s923_s24 = scalar_lea.vmem %s18_s16, 2048  ;;  %p928_p4 = scmp.lt.s32.totalorder %s18_s16, %s18_s16 }
   0x9   :  { %p924_p3 = scmp.ne.s32.totalorder %s18_s16, %s923_s24  ;;  %p929_p5 = scmp.lt.s32.totalorder %s923_s24, %s923_s24 }
   0xb   :  { %p930_p6 = por %p929_p5, %p928_p4 }
   0xd   :  { %p931_p7 = pnand %p930_p6, %p924_p3 }
   0xf   :  { %934 = shalt.err (!%p931_p7)
}
  0x10   :  { %20 = dma.hbm_to_vmem [thread:$0]  %s1027_s0, 2048, %s18_s16, [#allocation3]  }
  0x11   :  { %957 = dma.done.wait [#allocation3], 2048  }
  0x12   :  { %958 = vsyncadd [#allocation3], 4294965248  ;;  %v962_v0 = vmov 0   ;;  %v48_v1 = vld [vmem:[%s1029_s2] sm:$0x1f]  ;;  %v50_v5 = vlaneseq  ;;  %v964_v8 = vmov 0.0  }
  0x13   :  { %908 = vset.pattern.permute.xlu0 %v962_v0  ;;  %v49_v2 = vld [vmem:[%s1030_s3] sm:$0x1f]  ;;  %v963_v3 = vmov 1966171168   ;;  %v771_v9 = vcombine.low %v964_v8, %v964_v8  ;;  %vm222_vm1 = vcmask 1044480  }
  0x14   :  { %166 = vperm.xlu0 %908, %v48_v1   ;;  %v775_v4 = vunpack.c.l.s4 %v963_v3  ;;  %v51_v7 = vshrl.u32 %v50_v5, 7  ;;  %v46_v16 = vld [vmem:[%s1028_s1] sm:$0xff]  ;;  %v688_v50 = vand.u32 127, %v50_v5  ;;  %s965_s1 = smov [#allocation5]  }
  0x15   :  { %v30_v19 = vld [vmem:[#allocation2] sm:$0x1f]  ;;  %s878_s3 = sshll.u32 %s965_s1, 4  ;;  %s879_s3 = int_to_ptr.vmem [resolvable:$true] %s878_s3 }
  0x16   :  { %v776_v6 = vunpack.c.0.s8 %v775_v4  ;;  %v54_v15 = vsub.s32 0, %v51_v7  ;;  %vm722_vm2 = vcmp.lt.s32.totalorder %v688_v50, 8  ;;  %s935_s5 = scalar_lea.vmem %s879_s3, 256  ;;  %p940_p9 = scmp.lt.s32.totalorder %s879_s3, %s879_s3 }
  0x17   :  { %p936_p8 = scmp.ne.s32.totalorder %s879_s3, %s935_s5  ;;  %p941_p10 = scmp.lt.s32.totalorder %s935_s5, %s935_s5 }
  0x18   :  { %187 = vperm.xlu0 %908, %v49_v2   ;;  %v779_v10 = vsub.s32 %v776_v6, %v51_v7  ;;  %v55_v17 = vrot.slane %v46_v16, %v54_v15 }
  0x19   :  { %p942_p11 = por %p941_p10, %p940_p9 }
  0x1a   :  { %v787_v11 = vrot.slane %v771_v9, %v779_v10  ;;  %vm116_vm0 = vcmp.eq.s32.totalorder %v51_v7, %v55_v17 }
  0x1b   :  { %v887_v20 = vsel %vm116_vm0, 1.0, %v964_v8  ;;  %p943_p12 = pnand %p942_p11, %p936_p8 }
  0x1c   :  { %v803_v12 = vcombine.low %v787_v11, %v787_v11 }
  0x1e   :  { %v817_v13 = vrot.slane %v803_v12, %v779_v10 }
  0x20   :  { %v867_v14 = vcombine.low %v817_v13, %v817_v13 }
  0x22   :  { %871 = vst [vmem:[#allocation5 + $0x8] sm:$0xff] %v867_v14 }
  0x93   :  { %v167_v18 = vpop.permute.xlu0 %166 }
  0x94   :  { %v169_v22 = vmul.f32 %v167_v18, %v30_v19 }
  0x97   :  { %v188_v21 = vpop.permute.xlu0 %187 }
  0x98   :  { %v190_v23 = vmul.f32 %v887_v20, %v188_v21 }
  0x9a   :  { %v206_v24 = vsub.f32 %v169_v22, %v190_v23 }
  0x9c   :  { %v223_v25 = vsel %vm222_vm1, %v206_v24, -inf  ;;  %v543_v35 = vmul.f32 %v887_v20, %v206_v24 }
  0x9d   :  { %v224_v26 = vrot.slane %v223_v25, 4 }
  0x9e   :  { %v559_v39 = vsel %vm222_vm1, %v543_v35, 0.0 }
  0x9f   :  { %v225_v27 = vmax.f32 %v223_v25, %v224_v26  ;;  %v560_v41 = vrot.slane %v559_v39, 4 }
  0xa1   :  { %v226_v28 = vrot.slane %v225_v27, 2  ;;  %v561_v44 = vadd.f32 %v560_v41, %v559_v39 }
  0xa3   :  { %v227_v29 = vmax.f32 %v225_v27, %v226_v28  ;;  %v562_v46 = vrot.slane %v561_v44, 2 }
  0xa5   :  { %v228_v30 = vrot.slane %v227_v29, 1  ;;  %v563_v47 = vadd.f32 %v562_v46, %v561_v44 }
  0xa7   :  { %v229_v31 = vmax.f32 %v227_v29, %v228_v30  ;;  %v564_v48 = vrot.slane %v563_v47, 1 }
  0xa9   :  { %v335_v32 = vsub.f32 %v206_v24, %v229_v31  ;;  %v565_v53 = vadd.f32 %v564_v48, %v563_v47 }
  0xab   :  { %v351_v33 = vmul.f32 1.442695, %v335_v32 }
  0xad   :  { %909 = vpow2.f32 %v351_v33 }
  0xb7   :  { %v910_v34 = vpop.eup %909 }
  0xb8   :  { %v383_v36 = vsel %vm222_vm1, %v910_v34, 0.0 }
  0xb9   :  { %v384_v37 = vrot.slane %v383_v36, 4 }
  0xbb   :  { %v385_v38 = vadd.f32 %v384_v37, %v383_v36 }
  0xbd   :  { %v386_v40 = vrot.slane %v385_v38, 2 }
  0xbf   :  { %v387_v42 = vadd.f32 %v386_v40, %v385_v38 }
  0xc1   :  { %v388_v43 = vrot.slane %v387_v42, 1 }
  0xc3   :  { %v389_v45 = vadd.f32 %v388_v43, %v387_v42 }
  0xc5   :  { %911 = vlog2.f32 %v389_v45 }
  0xcf   :  { %v912_v49 = vpop.eup %911 }
  0xd0   :  { %v496_v51 = vmul.f32 0.6931472, %v912_v49 }
  0xd2   :  { %v527_v52 = vadd.f32 %v496_v51, %v229_v31 }
  0xd4   :  { %v671_v54 = vsub.f32 %v527_v52, %v565_v53 }
  0xd6   :  { %v738_v55 = vsel %vm722_vm2, %v671_v54, 0.0 }
  0xd7   :  { %v770_v56 = vcombine.low %v738_v55, %v964_v8 }
  0xd9   :  { %v780_v57 = vrot.slane %v770_v56, %v779_v10 }
  0xdb   :  { %v802_v58 = vcombine.low %v780_v57, %v787_v11 }
  0xdd   :  { %v810_v59 = vrot.slane %v802_v58, %v779_v10 }
  0xdf   :  { %v818_v60 = vcombine.low %v810_v59, %v817_v13 }
  0xe1   :  { %870 = vst [vmem:[#allocation5] sm:$0xff] %v818_v60 }
  0xe2   :  { %946 = shalt.err (!%p943_p12)
}
  0xe3   :  { %s947_s8 = scalar_lea.hbm %s1031_s4, 256 }
  0xe4   :  { %p948_p13 = scmp.ne.s32.totalorder %s1031_s4, %s947_s8  ;;  %p951_p0 = scmp.lt.u32.totalorder %s947_s8, %s1031_s4 }
  0xe6   :  { %p953_p1 = pnand %p951_p0, %p948_p13 }
  0xe8   :  { %956 = shalt.err (!%p953_p1)
}
  0xe9   :  { %881 = dma.vmem_to_hbm [thread:$0]  %s879_s3, 256, %s1031_s4, [#allocation4]  }
  0xea   :  { %959 = dma.done.wait [#allocation4], 256  }
  0xeb   :  { %960 = vsyncadd [#allocation4], 4294967040 }
  0xec   :  { %885 = vsyncpa [#allocation3], 1 }
  0xed   :  { %886 = vsyncpa [#allocation4], 1 }

</bundles_post_ra>
